<compile_context>
chip_gen: v7x
topology: tpu7x:2x2x1
jax: 0.10.0
libtpu: 0.0.40
codegen_flags: <defaults>
</compile_context>

<pallas_src>
import functools

import jax
import jax.numpy as jnp
from jax import lax
from jax.experimental import pallas as pl
from jax.experimental.pallas import tpu as pltpu

V_SMPLX = 10475
JOINT_MAPPER = [1, 2, 4, 5, 7, 8, 12, 15, 16, 17, 18, 19, 20, 21]
N_JOINTS = 1 + len(JOINT_MAPPER)        # 15 regressed joints
N_PAD = 48                              # 15*3 = 45 output columns, padded to 48
TK = 2048                               # K tile (multiple of 128); K = V*3 = 31425
TM_MAX = 512                            # M tile cap, sized for v7x 64 MiB VMEM


# ----------------------------------------------------------------------------
# Pallas kernel: gridded joint-regression matmul  out = mesh2d @ B_blockdiag
#   A block (tm, TK) f32 read from HBM once, cast to bf16 in-kernel.
#   B block (TK, 48) bf16, resident per K step (index_map (k, 0)).
#   f32 accumulator scratch; init at k==0, store at k==last (P3 pattern).
# ----------------------------------------------------------------------------
def _jreg_kernel(a_ref, b_ref, o_ref, acc_ref, *, k_valid, tk):
    k = pl.program_id(1)

    @pl.when(k == 0)
    def _init():
        acc_ref[...] = jnp.zeros_like(acc_ref)

    a = a_ref[...]
    # Mask the ragged K tail (31425 % 2048 != 0): boundary-block columns beyond the
    # array are undefined, so zero them before feeding the MXU.  The select is VPU
    # work hidden under the HBM-bound DMA.
    col = lax.broadcasted_iota(jnp.int32, a.shape, 1) + k * tk
    a = jnp.where(col < k_valid, a, 0.0).astype(jnp.bfloat16)
    acc_ref[...] += jnp.dot(a, b_ref[...], preferred_element_type=jnp.float32)

    @pl.when(k == pl.num_programs(1) - 1)
    def _store():
        o_ref[...] = acc_ref[...]


def build_block_diag_regressor(j_regressor):
    """(55, V) f32 -> (Kp, 48) bf16 block-diagonal regressor.

    B[v*3 + c, j*3 + c'] = J_sel[j, v] * (c == c'), so that
    mesh.reshape(T, V*3) @ B == per-frame J_sel @ mesh (flattened joints x xyz).
    Padded with zeros along K to a multiple of TK and along N to 48 columns so the
    kernel never sees a ragged B tile.  Built ONCE from params, outside the jitted
    forward (static model weight — no per-call rebuild).
    """
    j_sel = jnp.asarray(j_regressor, jnp.float32)[jnp.array([0] + JOINT_MAPPER)]
    nj, v = j_sel.shape
    k = v * 3
    kp = ((k + TK - 1) // TK) * TK
    b = jnp.kron(j_sel.T, jnp.eye(3, dtype=jnp.float32))          # (V*3, 45)
    b = jnp.zeros((kp, N_PAD), jnp.float32).at[:k, : nj * 3].set(b)
    return b.astype(jnp.bfloat16)


def regress_joints(b_blockdiag, mesh):
    """mesh: (T, V, 3) f32 -> (T, 15, 3) f32 via one gridded Pallas MXU matmul.

    A is the mesh viewed as (T, V*3) — its native row-major element order (minor-dim
    merge only; no transpose, no wrapper-side K padding).
    """
    t, v, _ = mesh.shape
    k = v * 3
    kp, n_pad = b_blockdiag.shape
    a = mesh.reshape(t, k).astype(jnp.float32)

    tm = t if t <= TM_MAX else TM_MAX
    grid = (pl.cdiv(t, tm), kp // TK)

    out = pl.pallas_call(
        functools.partial(_jreg_kernel, k_valid=k, tk=TK),
        out_shape=jax.ShapeDtypeStruct((t, n_pad), jnp.float32),
        grid_spec=pltpu.PrefetchScalarGridSpec(
            num_scalar_prefetch=0,
            grid=grid,
            in_specs=[
                pl.BlockSpec((tm, TK), lambda i, kk: (i, kk)),
                pl.BlockSpec((TK, n_pad), lambda i, kk: (kk, 0)),
            ],
            out_specs=pl.BlockSpec((tm, n_pad), lambda i, kk: (i, 0)),
            scratch_shapes=[pltpu.VMEM((tm, n_pad), jnp.float32)],
        ),
        compiler_params=pltpu.CompilerParams(
            dimension_semantics=("parallel", "arbitrary")),
        cost_estimate=pl.CostEstimate(
            flops=2 * t * k * N_JOINTS * 3,
            transcendentals=0,
            bytes_accessed=t * k * 4 + kp * n_pad * 2 + t * n_pad * 4),
    )(a, b_blockdiag)

    return out[:, : N_JOINTS * 3].reshape(t, N_JOINTS, 3)


# ----------------------------------------------------------------------------
# Small / launch-bound pieces stay in plain XLA (per perf review).
# ----------------------------------------------------------------------------
def motion_prior_apply(mp_params, kps):
    """kps: (1, T, J, 3) -> (1, T, 3)."""
    # TODO(synk): the real WHAC motion-prior architecture is not given by the module;
    # a per-frame MLP (45 -> 32 -> 3) stands in for it.
    _, t, j, _ = kps.shape
    x = kps.reshape(t, j * 3).astype(jnp.float32)
    h = jnp.maximum(x @ mp_params["w1"] + mp_params["b1"], 0.0)
    return (h @ mp_params["w2"] + mp_params["b2"])[None]          # (1, T, 3)


def invert_transformation(m44):
    r = m44[:3, :3]
    t = m44[:3, 3]
    r_inv = r.T
    return (jnp.eye(4, dtype=m44.dtype)
            .at[:3, :3].set(r_inv)
            .at[:3, 3].set(-r_inv @ t))


def batch_rodrigues(aa, eps=1e-8):
    """(T,3) axis-angle -> (T,3,3) rotation matrices (standard SMPL-X formulation)."""
    angle = jnp.linalg.norm(aa + eps, axis=1, keepdims=True)
    axis = aa / angle
    c = jnp.cos(angle)[..., None]
    s = jnp.sin(angle)[..., None]
    rx, ry, rz = axis[:, 0], axis[:, 1], axis[:, 2]
    zeros = jnp.zeros_like(rx)
    kmat = jnp.stack([zeros, -rz, ry,
                      rz, zeros, -rx,
                      -ry, rx, zeros], axis=1).reshape(-1, 3, 3)
    eye = jnp.eye(3, dtype=aa.dtype)[None]
    outer = axis[:, :, None] * axis[:, None, :]
    return c * eye + (1.0 - c) * outer + s * kmat


def _similarity_scale(src, dst):
    """Umeyama similarity scale mapping src -> dst. src/dst: (N, 3)."""
    n = src.shape[0]
    sc = src - src.mean(axis=0)
    dc = dst - dst.mean(axis=0)
    var_s = jnp.sum(sc * sc) / n
    cov = dc.T @ sc / n
    u, d, vt = jnp.linalg.svd(cov)
    sgn = jnp.sign(jnp.linalg.det(u) * jnp.linalg.det(vt))
    s_diag = jnp.where(jnp.arange(3) == 2, sgn, 1.0).astype(src.dtype)
    return jnp.sum(d * s_diag) / var_s


def _squeeze_to_rank(x, rank):
    """Drop leading singleton (batch) axes until x.ndim == rank.

    Unlike a bare .squeeze(), this never drops the time axis when T == 1.
    """
    while x.ndim > rank and x.shape[0] == 1:
        x = jnp.squeeze(x, axis=0)
    return x


# ----------------------------------------------------------------------------
# Model forward (test mode)
# ----------------------------------------------------------------------------
def model_forward(params, inputs, targets, meta_info, mode="test"):
    del targets, meta_info
    if mode == "train":
        raise NotImplementedError("Training is not yet implemented.")

    cam_mesh = _squeeze_to_rank(inputs["smplx_mesh_cam_gt_focal"], 3).astype(jnp.float32)
    ext_rot_mat = _squeeze_to_rank(inputs["slam_extrinsics"], 3).astype(jnp.float32)
    smplx_rotation_aa = _squeeze_to_rank(inputs["smplx_root_pose"], 2).astype(jnp.float32)
    transl = _squeeze_to_rank(inputs["cam_trans_gt_focal"], 2).astype(jnp.float32)
    T = cam_mesh.shape[0]

    if cam_mesh.shape[1] != V_SMPLX:
        raise ValueError("expected an SMPL-X mesh with 10475 vertices")

    # (1) Joint regression: the only real compute — one Pallas MXU matmul.
    cam_kps3d = regress_joints(params["J_reg_blockdiag"], cam_mesh)           # (T,15,3)
    nj = cam_kps3d.shape[1]
    cam_kps3d_homo = jnp.concatenate(
        [cam_kps3d, jnp.ones((T, nj, 1), jnp.float32)], axis=2)               # (T,15,4)

    start_frame = invert_transformation(ext_rot_mat[0])
    ext_rot_mat_offset = jnp.einsum("ij,tjk->tik", start_frame, ext_rot_mat)  # (T,4,4)

    smplx_rotation_mat = batch_rodrigues(smplx_rotation_aa)                   # (T,3,3)
    smplx_transl = jnp.concatenate([transl, jnp.ones((T, 1), jnp.float32)], axis=1)
    smplx_transl_homo = (jnp.zeros_like(ext_rot_mat)
                         .at[:, :3, :3].set(smplx_rotation_mat)
                         .at[:, :, 3].set(smplx_transl))                      # (T,4,4)

    inv_s0 = invert_transformation(smplx_transl_homo[0])

    # (2) camera -> canonical world keypoints.  The two per-frame SE(3)s are composed
    # so the points go through one plain-XLA einsum (few KFLOP; a Pallas launch would
    # cost more than the work — perf review).
    cam2cano = jnp.einsum("ij,tjk->tik", inv_s0, ext_rot_mat_offset)          # (T,4,4)
    cano_world_kps3d_homo = jnp.einsum("tij,tkj->tki", cam2cano, cam_kps3d_homo)
    cano_offset = cano_world_kps3d_homo - cano_world_kps3d_homo[:, 0:1, :]

    # (3) motion prior + cumulative trajectory.
    whac_in = cano_offset[None, :, :, :3]                                     # (1,T,15,3)
    mp_out = motion_prior_apply(params["motion_prior"], whac_in)              # (1,T,3)
    scaled_slam_traj = jnp.cumsum(mp_out, axis=1)                             # (1,T,3)
    human_slam_traj_world = whac_in + scaled_slam_traj[:, :, None, :]         # (1,T,15,3)

    # (4) WHAC camera trajectory (tiny 4x4 chains stay in XLA glue).
    t_h2w = jnp.einsum("tij,tjk->tik", ext_rot_mat_offset, smplx_transl_homo)
    t_h2cano = jnp.einsum("ij,tjk->tik", inv_s0, t_h2w)
    t_cam2h = jax.vmap(invert_transformation)(smplx_transl_homo)[:, :3, 3]
    whac_t = (jnp.einsum("tij,tj->ti", t_h2cano[:, :3, :3], t_cam2h)
              + scaled_slam_traj[0]
              + cano_world_kps3d_homo[0, 0, :3][None, :])                     # (T,3)

    # (5) sliding-window scale between WHAC and SLAM trajectories (vmapped SVDs).
    out = {}
    n = 5
    slam_t = ext_rot_mat_offset[:, :3, 3]
    num_w = T - n + 1
    win = jnp.arange(num_w)[:, None] + jnp.arange(n)[None, :]                 # (num_w, n)
    # TODO(synk): `global_align_joints` is an external util; the Umeyama similarity
    # scale aligning each SLAM window onto the WHAC window stands in for it.
    scales = jax.vmap(_similarity_scale)(slam_t[win], whac_t[win])            # (num_w,)
    # NOTE: nan_to_num(., 0) before the nanmedian matches `np.nan_to_num(scale, nan=0)`
    # in the reference module (degenerate windows become 0.0 samples there too).
    scales = jnp.nan_to_num(scales, nan=0.0).astype(jnp.float32)
    whac_scale_arr = jnp.concatenate(
        [scales, jnp.full((n - 1,), jnp.nan, jnp.float32)])
    out["whac_scale"] = whac_scale_arr.reshape(-1, 1)
    whac_scale = jnp.nanmedian(whac_scale_arr)

    scaled_slam_extrinsics = ext_rot_mat_offset.at[:, :3, 3].multiply(whac_scale)
    scaled_slam_extrinsics = jnp.einsum("ij,tjk->tik", ext_rot_mat[0],
                                        scaled_slam_extrinsics)

    # (6) canonical -> global world human trajectory.  The two constant SE(3)s are
    # composed (ext_rot_mat[0] @ smplx_transl_homo[0]) so the points are transformed
    # once, directly in 3D (implicit w=1), in plain XLA.
    human_traj = human_slam_traj_world[0]                                     # (T,15,3)
    cano2global = ext_rot_mat[0] @ smplx_transl_homo[0]                       # (4,4)
    human_traj_global = (jnp.einsum("ij,tkj->tki", cano2global[:3, :3], human_traj)
                         + cano2global[:3, 3])

    out["world_mp_human_traj"] = human_traj_global
    out["world_cano_scaled_slam_human_traj"] = human_traj
    out["scaled_slam_extrinsics"] = scaled_slam_extrinsics
    out["whac_mp_cam_traj"] = whac_t[:, :3].astype(jnp.float32)
    out["smplx_mesh_cam"] = inputs["smplx_mesh_cam"]
    out["smplx_mesh_cam_gt_focal"] = inputs["smplx_mesh_cam_gt_focal"]
    out["slam_extrinsics"] = inputs["slam_extrinsics"]
    return out


# ----------------------------------------------------------------------------
# Deterministic params / inputs and driver
# ----------------------------------------------------------------------------
def make_se3(key_rot, key_trans, t_frames):
    aa = jax.random.normal(key_rot, (t_frames, 3), jnp.float32) * 0.3
    rot = batch_rodrigues(aa)
    trans = jax.random.normal(key_trans, (t_frames, 3), jnp.float32)
    return (jnp.zeros((t_frames, 4, 4), jnp.float32)
            .at[:, :3, :3].set(rot)
            .at[:, :3, 3].set(trans)
            .at[:, 3, 3].set(1.0))


if __name__ == "__main__":
    key = jax.random.PRNGKey(0)
    keys = jax.random.split(key, 10)

    V = V_SMPLX
    T_FRAMES = 8
    HIDDEN = 32

    # Synthetic SMPL-X joint regressor (55 x 10475), row-normalized like the real one.
    j_reg = jax.random.uniform(keys[0], (55, V), jnp.float32)
    j_reg = j_reg / j_reg.sum(axis=1, keepdims=True)

    params = {
        # Precomputed once (outside the jitted forward) from the static J_regressor.
        "J_reg_blockdiag": build_block_diag_regressor(j_reg),
        "motion_prior": {
            "w1": jax.random.normal(keys[1], (45, HIDDEN), jnp.float32) * 0.1,
            "b1": jnp.zeros((1, HIDDEN), jnp.float32),
            "w2": jax.random.normal(keys[2], (HIDDEN, 3), jnp.float32) * 0.1,
            "b2": jnp.zeros((1, 3), jnp.float32),
        },
    }

    # Inputs carry the module's explicit leading batch axis of 1.
    inputs = {
        "smplx_mesh_cam_gt_focal":
            jax.random.normal(keys[3], (1, T_FRAMES, V, 3), jnp.float32) * 0.2,
        "smplx_mesh_cam":
            jax.random.normal(keys[4], (1, T_FRAMES, V, 3), jnp.float32) * 0.2,
        "slam_extrinsics": make_se3(keys[5], keys[6], T_FRAMES)[None],
        "smplx_root_pose":
            jax.random.normal(keys[7], (1, T_FRAMES, 3), jnp.float32) * 0.5,
        "cam_trans_gt_focal":
            jax.random.normal(keys[8], (1, T_FRAMES, 3), jnp.float32),
    }

    # Spot-check the Pallas regression against a bf16-matched XLA reference.
    mesh0 = inputs["smplx_mesh_cam_gt_focal"][0]
    j_sel = j_reg[jnp.array([0] + JOINT_MAPPER)]
    ref = jnp.einsum("jv,tvc->tjc",
                     j_sel.astype(jnp.bfloat16).astype(jnp.float32),
                     mesh0.astype(jnp.bfloat16).astype(jnp.float32))
    got = regress_joints(params["J_reg_blockdiag"], mesh0)
    err = float(jnp.max(jnp.abs(got - ref)))
    assert err < 1e-4, f"joint regression mismatch: {err}"

    forward = jax.jit(functools.partial(model_forward, mode="test"))
    out = forward(params, inputs, {}, {})
    out = jax.block_until_ready(out)

    # light sanity checks on output shapes
    assert out["whac_scale"].shape == (T_FRAMES, 1)
    assert out["world_mp_human_traj"].shape == (T_FRAMES, 15, 3)
    assert out["world_cano_scaled_slam_human_traj"].shape == (T_FRAMES, 15, 3)
    assert out["scaled_slam_extrinsics"].shape == (T_FRAMES, 4, 4)
    assert out["whac_mp_cam_traj"].shape == (T_FRAMES, 3)

    print("KERNEL_OK")
</pallas_src>

<mosaic_0001>
module attributes {stable_mosaic.version = 11 : i64} {
  func.func @_jreg_kernel(%arg0: i32, %arg1: i32, %arg2: memref<8x2048xf32, #tpu.memory_space<vmem>>, %arg3: memref<2048x48xbf16, #tpu.memory_space<vmem>>, %arg4: memref<8x48xf32, #tpu.memory_space<vmem>>, %arg5: memref<8x48xf32, #tpu.memory_space<vmem>>) attributes {dimension_semantics = [#tpu.dimension_semantics<parallel>, #tpu.dimension_semantics<arbitrary>], iteration_bounds = array<i64: 1, 16>, scalar_prefetch = 0 : i64, scratch_operands = 1 : i64, tpu.core_type = #tpu.core_type<tc>, window_params = [{transform_indices = @transform_0, window_bounds = array<i64: 8, 2048>}, {transform_indices = @transform_1, window_bounds = array<i64: 2048, 48>}, {transform_indices = @transform_2, window_bounds = array<i64: 8, 48>}]} {
    %c0_i32 = arith.constant 0 : i32
    %0 = arith.cmpi eq, %arg1, %c0_i32 : i32
    %1 = arith.extui %0 : i1 to i32
    %c0_i32_0 = arith.constant 0 : i32
    %2 = arith.cmpi ne, %1, %c0_i32_0 : i32
    scf.if %2 {
      %cst_10 = arith.constant 0.000000e+00 : f32
      %21 = vector.broadcast %cst_10 : f32 to vector<8x48xf32>
      %c0_11 = arith.constant 0 : index
      %c0_12 = arith.constant 0 : index
      %22 = vector.load %arg5[%c0_11, %c0_12] : memref<8x48xf32, #tpu.memory_space<vmem>>, vector<8x48xf32>
      tpu.vector_store %arg5[%c0_11, %c0_12], %21 {strides = array<i32>} : memref<8x48xf32, #tpu.memory_space<vmem>>, vector<8x48xf32>,
    } else {
    }
    %c0 = arith.constant 0 : index
    %c0_1 = arith.constant 0 : index
    %3 = vector.load %arg2[%c0, %c0_1] : memref<8x2048xf32, #tpu.memory_space<vmem>>, vector<8x2048xf32>
    %4 = tpu.iota {dimensions = array<i32: 1>} : vector<8x2048xi32>
    %c2048_i32 = arith.constant 2048 : i32
    %5 = arith.muli %arg1, %c2048_i32 : i32
    %6 = vector.broadcast %5 : i32 to vector<8x2048xi32>
    %7 = arith.addi %4, %6 : vector<8x2048xi32>
    %c31425_i32 = arith.constant 31425 : i32
    %8 = vector.broadcast %c31425_i32 : i32 to vector<8x2048xi32>
    %9 = arith.cmpi slt, %7, %8 : vector<8x2048xi32>
    %cst = arith.constant 0.000000e+00 : f32
    %10 = vector.broadcast %cst : f32 to vector<8x2048xf32>
    %11 = arith.select %9, %3, %10 : vector<8x2048xi1>, vector<8x2048xf32>
    %12 = arith.truncf %11 : vector<8x2048xf32> to vector<8x2048xbf16>
    %c0_2 = arith.constant 0 : index
    %c0_3 = arith.constant 0 : index
    %13 = vector.load %arg5[%c0_2, %c0_3] : memref<8x48xf32, #tpu.memory_space<vmem>>, vector<8x48xf32>
    %c0_4 = arith.constant 0 : index
    %c0_5 = arith.constant 0 : index
    %14 = vector.load %arg3[%c0_4, %c0_5] : memref<2048x48xbf16, #tpu.memory_space<vmem>>, vector<2048x48xbf16>
    %cst_6 = arith.constant dense<0.000000e+00> : vector<8x48xf32>
    %15 = tpu.matmul %12, %14, %cst_6 {dimension_numbers = #tpu.dot_dimension_numbers<[1], [0], [0], [1], [0, 0, 1, 1], [], []>} : vector<8x2048xbf16>, vector<2048x48xbf16>, vector<8x48xf32> -> vector<8x48xf32>
    %16 = arith.addf %13, %15 : vector<8x48xf32>
    %c0_7 = arith.constant 0 : index
    %c0_8 = arith.constant 0 : index
    %17 = vector.load %arg5[%c0_7, %c0_8] : memref<8x48xf32, #tpu.memory_space<vmem>>, vector<8x48xf32>
    tpu.vector_store %arg5[%c0_7, %c0_8], %16 {strides = array<i32>} : memref<8x48xf32, #tpu.memory_space<vmem>>, vector<8x48xf32>,
    %c15_i32 = arith.constant 15 : i32
    %18 = arith.cmpi eq, %arg1, %c15_i32 : i32
    %19 = arith.extui %18 : i1 to i32
    %c0_i32_9 = arith.constant 0 : i32
    %20 = arith.cmpi ne, %19, %c0_i32_9 : i32
    scf.if %20 {
      %c0_10 = arith.constant 0 : index
      %c0_11 = arith.constant 0 : index
      %21 = vector.load %arg5[%c0_10, %c0_11] : memref<8x48xf32, #tpu.memory_space<vmem>>, vector<8x48xf32>
      %c0_12 = arith.constant 0 : index
      %c0_13 = arith.constant 0 : index
      %22 = vector.load %arg4[%c0_12, %c0_13] : memref<8x48xf32, #tpu.memory_space<vmem>>, vector<8x48xf32>
      tpu.vector_store %arg4[%c0_12, %c0_13], %21 {strides = array<i32>} : memref<8x48xf32, #tpu.memory_space<vmem>>, vector<8x48xf32>,
    } else {
    }
    return
  }
  func.func @transform_0(%arg0: i32, %arg1: i32) -> (i32, i32) {
    %c0_i32 = arith.constant 0 : i32
    return %arg0, %arg1 : i32, i32
  }
  func.func @transform_1(%arg0: i32, %arg1: i32) -> (i32, i32) {
    %c0_i32 = arith.constant 0 : i32
    %c0_i32_0 = arith.constant 0 : i32
    return %arg1, %c0_i32 : i32, i32
  }
  func.func @transform_2(%arg0: i32, %arg1: i32) -> (i32, i32) {
    %c0_i32 = arith.constant 0 : i32
    %c0_i32_0 = arith.constant 0 : i32
    return %arg0, %c0_i32 : i32, i32
  }
}

</mosaic_0001>

<bundles_post_ra>
// kernel: tpu_custom_call.1
= control target key start
LH: loop header
LB: loop body
LE: loop exit
PB: predicated region body
PF: predicated region fallthrough
CT: control target
= control target key end

     0   :  { %7 = vsyncpa [#allocation4], 0  ;;  %s2340_s9 = smov 0   ;;  %s2342_s10 = smov 0   ;;  %s2621_s0 = inlined_call_operand.vmem [shape: f32[8,31425], index: 0, kind: input, shape index: {}]   ;;  %s2622_s1 = inlined_call_operand.vmem [shape: bf16[32768,48], index: 1, kind: input, shape index: {}]   ;;  %s2623_s2 = inlined_call_operand.hbm [shape: f32[8,48], index: 2, kind: output, shape index: {}]  }
   0x1   :  { %s2344_s11 = smov 0  }
   0x2 LB: > { %s1742_s12 = sadd.s32 4294967295, %s2321_s11   ;;  %s22_s13 = sadd.s32 1, %s2317_s10  ;;  %s2321_s11 = sphi %s2344_s11, %s13_s11   ;;  %s2317_s10 = sphi %s2342_s10, %s2626_s10   ;;  %s2313_s9 = sphi %s2340_s9, %s2625_s9  }
   0x3   : > { %p23_p0 = scmp.ge.s32.totalorder %s22_s13, 16  ;;  %p1745_p1 = scmp.ge.s32.totalorder %s2321_s11, 1 }
   0x4   : > { %p151_p2 = scmp.lt.s32.totalorder %s2321_s11, 17 }
   0x5   : > { %s2628_s13 = smov (%p23_p0, %s22_s13), 0 }
   0x6   : > { %p152_p3 = pnand %p1745_p1, %p151_p2 }
   0x7   : > { %s1746_s14 = sshll.u32 (!%p152_p3), %s2313_s9, 4  ;;  %s1748_s15 = sshll.u32 (!%p152_p3), %s2313_s9, 8 }
   0x8   : > { %155 = sbr.rel (%p152_p3) target bundleno = 410 (0x19a), region = 28  ;;  %p188_p4 = scmp.lt.s32.totalorder (!%p152_p3), %s1746_s14, 245 }
   0x9   : > { %p200_p5 = scmp.lt.s32.totalorder (!%p152_p3), %s1748_s15, 4095  ;;  %p1750_p6 = scmp.ne.s32.totalorder (!%p152_p3), %s2313_s9, 0 }
   0xf   : > { %s2630_s14 = smov (!%p188_p4, %s1746_s14), 245  ;;  %s2632_s15 = smov (!%p200_p5, %s1748_s15), 4095 }
  0x10   : > { %s1747_s16 = sshll.u32 %s2630_s14, 3  ;;  %s1749_s20 = sshll.u32 %s2632_s15, 2  ;;  %vm210_vm0 = vcmask (!%p1750_p6), 392192   ;;  %v2323_v0 = vmov (!%p1750_p6), 0.0  }
  0x11   : > { %s2366_s19 = scalar_lea.vmem %s2621_s0, %s1747_s16  ;;  %s2371_s23 = scalar_lea.vmem %s2622_s1, %s1749_s20  ;;  %211 = vst.msk [vmem:[#allocation2] sm:$0xff] (!%p1750_p6), %vm210_vm0, %v2323_v0 }
  0x12   : > { %209 = sbr.rel (%p1750_p6) target bundleno = 25 (0x19), region = 32 }
  0x19 PF: > { %v2141_v1 = vld [vmem:[%s2371_s23 + $0x40] sm:$0xff]   ;;  %v2145_v5 = vld [vmem:[%s2371_s23 + $0x48] sm:$0xff]   ;;  %v2149_v9 = vld [vmem:[%s2371_s23 + $0x50] sm:$0xff]   ;;  %v228_v13 = vlaneseq  ;;  %s1751_s24 = sshll.u32 %s2313_s9, 11  ;;  %p1928_p7 = scmp.ne.s32.totalorder %s2313_s9, 15 }
  0x1a   : > { %v2142_v2 = vld [vmem:[%s2371_s23 + $0xc0] sm:$0xff]   ;;  %1933 = vmatprep.subr.bf16.mxu0 %v2141_v1  ;;  %v2146_v6 = vld [vmem:[%s2371_s23 + $0xc8] sm:$0xff]   ;;  %v2150_v10 = vld [vmem:[%s2371_s23 + $0xd0] sm:$0xff]   ;;  %v2396_v22 = vstv %s1751_s24 }
  0x1b   : > { %v2143_v3 = vld [vmem:[%s2371_s23] sm:$0xff]   ;;  %1955 = vmatprep.subr.bf16.mxu1 %v2142_v2  ;;  %v2147_v7 = vld [vmem:[%s2371_s23 + $0x8] sm:$0xff]   ;;  %v2151_v11 = vld [vmem:[%s2371_s23 + $0x10] sm:$0xff]   ;;  %v2391_v18 = vand.u32 127, %v228_v13 }
  0x1c   : > { %v2144_v4 = vld [vmem:[%s2371_s23 + $0x80] sm:$0xff]   ;;  %1934 = vmatpush3.bf16.msra.mxu0 %v2143_v3  ;;  %v2148_v8 = vld [vmem:[%s2371_s23 + $0x88] sm:$0xff]   ;;  %v2152_v12 = vld [vmem:[%s2371_s23 + $0x90] sm:$0xff]  }
  0x1d   : > { %1956 = vmatpush3.bf16.msra.mxu1 %v2144_v4  ;;  %1935 = vmatprep.subr.bf16.mxu0 %v2145_v5  ;;  %v2153_v14 = vld [vmem:[%s2371_s23 + $0x58] sm:$0xff]   ;;  %v2157_v19 = vld [vmem:[%s2371_s23 + $0x60] sm:$0xff]   ;;  %v238_v23 = vadd.s32 1152, %v2391_v18  ;;  %v230_v25 = vadd.s32 128, %v2391_v18  ;;  %v2161_v26 = vld [vmem:[%s2371_s23 + $0x68] sm:$0xff]   ;;  %v240_v28 = vadd.s32 1408, %v2391_v18  ;;  %v247_v30 = vadd.s32 %v2396_v22, %v2391_v18 }
  0x1e   : > { %1957 = vmatprep.subr.bf16.mxu1 %v2146_v6  ;;  %v2154_v15 = vld [vmem:[%s2371_s23 + $0xd8] sm:$0xff]   ;;  %v2158_v20 = vld [vmem:[%s2371_s23 + $0xe0] sm:$0xff]   ;;  %v2162_v29 = vld [vmem:[%s2371_s23 + $0xe8] sm:$0xff]   ;;  %v237_v31 = vadd.s32 1024, %v2391_v18  ;;  %v232_v33 = vadd.s32 384, %v2391_v18  ;;  %v239_v38 = vadd.s32 1280, %v2391_v18 }
  0x1f   : > { %v2155_v16 = vld [vmem:[%s2371_s23 + $0x18] sm:$0xff]   ;;  %v2159_v21 = vld [vmem:[%s2371_s23 + $0x20] sm:$0xff]   ;;  %v2403_v27 = vadd.s32 %v2396_v22, %v238_v23  ;;  %v2163_v32 = vld [vmem:[%s2371_s23 + $0x28] sm:$0xff]   ;;  %v2413_v34 = vadd.s32 %v2396_v22, %v240_v28  ;;  %v248_v36 = vadd.s32 %v2396_v22, %v230_v25  ;;  %v231_v40 = vadd.s32 256, %v2391_v18 }
  0x20   : > { %1936 = vmatpush3.bf16.msra.mxu0 %v2147_v7  ;;  %v2156_v17 = vld [vmem:[%s2371_s23 + $0x98] sm:$0xff]   ;;  %v2160_v24 = vld [vmem:[%s2371_s23 + $0xa0] sm:$0xff]   ;;  %v2164_v35 = vld [vmem:[%s2371_s23 + $0xa8] sm:$0xff]   ;;  %v2418_v37 = vadd.s32 %v2396_v22, %v237_v31  ;;  %vm263_vm1 = vcmp.lt.s32.totalorder %v247_v30, 31425  ;;  %v2425_v42 = vadd.s32 %v2396_v22, %v239_v38  ;;  %v250_v44 = vadd.s32 %v2396_v22, %v232_v33 }
  0x21   : > { %1958 = vmatpush3.bf16.msra.mxu1 %v2148_v8  ;;  %1937 = vmatprep.subr.bf16.mxu0 %v2149_v9  ;;  %v2165_v39 = vld [vmem:[%s2371_s23 + $0x70] sm:$0xff]   ;;  %v242_v45 = vadd.s32 1664, %v2391_v18  ;;  %vm264_vm2 = vcmp.lt.s32.totalorder %v248_v36, 31425  ;;  %v2169_v47 = vld [vmem:[%s2371_s23 + $0x78] sm:$0xff]   ;;  %v249_v48 = vadd.s32 %v2396_v22, %v231_v40  ;;  %v244_v50 = vadd.s32 1920, %v2391_v18  ;;  %v213_v58 = vld [vmem:[%s2366_s19 + $0x8] sm:$0xff] }
  0x22   : > { %1959 = vmatprep.subr.bf16.mxu1 %v2150_v10  ;;  %v2166_v41 = vld [vmem:[%s2371_s23 + $0xf0] sm:$0xff]   ;;  %v2170_v51 = vld [vmem:[%s2371_s23 + $0xf8] sm:$0xff]   ;;  %v241_v52 = vadd.s32 1536, %v2391_v18  ;;  %vm266_vm3 = vcmp.lt.s32.totalorder %v250_v44, 31425  ;;  %v243_v57 = vadd.s32 1792, %v2391_v18  ;;  %vm1880_vm4 = vmpackc.low %vm264_vm2, %vm264_vm2  ;;  %v1881_v60 = vpack.c.bf16 %v213_v58, %v213_v58 }
  0x23   : > { %v2167_v43 = vld [vmem:[%s2371_s23 + $0x30] sm:$0xff]   ;;  %v2434_v49 = vadd.s32 %v2396_v22, %v242_v45  ;;  %v2171_v53 = vld [vmem:[%s2371_s23 + $0x38] sm:$0xff]   ;;  %v2441_v54 = vadd.s32 %v2396_v22, %v244_v50  ;;  %vm265_vm5 = vcmp.lt.s32.totalorder %v249_v48, 31425  ;;  %vm1886_vm6 = vmpackc.low %vm266_vm3, %vm266_vm3  ;;  %v234_v28 = vadd.s32 640, %v2391_v18 }
  0x24   : > { %1938 = vmatpush3.bf16.msra.mxu0 %v2151_v11  ;;  %v2168_v46 = vld [vmem:[%s2371_s23 + $0xb0] sm:$0xff]   ;;  %v2172_v55 = vld [vmem:[%s2371_s23 + $0xb8] sm:$0xff]   ;;  %v2445_v56 = vadd.s32 %v2396_v22, %v241_v52  ;;  %v212_v62 = vld [vmem:[%s2366_s19] sm:$0xff]  ;;  %v2455_v0 = vadd.s32 %v2396_v22, %v243_v57  ;;  %1882 = vmatprep.mubr.msk.bf16.mxu0 %vm1880_vm4, %v1881_v60  ;;  %v236_v30 = vadd.s32 896, %v2391_v18  ;;  %vm274_vm2 = vcmp.lt.s32.totalorder %v2413_v34, 31425 }
  0x25   : > { %1960 = vmatpush3.bf16.msra.mxu1 %v2152_v12  ;;  %1939 = vmatprep.subr.bf16.mxu0 %v2153_v14  ;;  %v215_v59 = vld [vmem:[%s2366_s19 + $0x18] sm:$0xff]  ;;  %v214_v63 = vld [vmem:[%s2366_s19 + $0x10] sm:$0xff]  ;;  %vm1883_vm7 = vmpackc.low %vm263_vm1, %vm263_vm1  ;;  %v1884_v1 = vpack.c.bf16 %v212_v62, %v212_v62  ;;  %v252_v38 = vadd.s32 %v2396_v22, %v234_v28  ;;  %vm272_vm1 = vcmp.lt.s32.totalorder %v2403_v27, 31425  ;;  %vm271_vm3 = vcmp.lt.s32.totalorder %v2418_v37, 31425 }
  0x26   : > { %1961 = vmatprep.subr.bf16.mxu1 %v2154_v15  ;;  %v1887_v61 = vpack.c.bf16 %v215_v59, %v215_v59  ;;  %v1890_v2 = vpack.c.bf16 %v214_v63, %v214_v63  ;;  %vm1889_vm8 = vmpackc.low %vm265_vm5, %vm265_vm5  ;;  %v2173_v3 = vld [vmem:[%s2371_s23 + $0x140] sm:$0xff]   ;;  %v2177_v7 = vld [vmem:[%s2371_s23 + $0x148] sm:$0xff]   ;;  %v254_v40 = vadd.s32 %v2396_v22, %v236_v30  ;;  %vm273_vm5 = vcmp.lt.s32.totalorder %v2425_v42, 31425 }
  0x27   : > { %v2174_v4 = vld [vmem:[%s2371_s23 + $0x1c0] sm:$0xff]   ;;  %v2178_v8 = vld [vmem:[%s2371_s23 + $0x1c8] sm:$0xff]   ;;  %v2181_v11 = vld [vmem:[%s2371_s23 + $0x150] sm:$0xff]   ;;  %vm268_vm9 = vcmp.lt.s32.totalorder %v252_v38, 31425 }
  0x28   : > { %1940 = vmatpush3.bf16.msra.mxu0 %v2155_v16  ;;  %1888 = vmatprep.mubr.msk.bf16.mxu1 %vm1886_vm6, %v1887_v61  ;;  %v2175_v5 = vld [vmem:[%s2371_s23 + $0x100] sm:$0xff]   ;;  %v2179_v9 = vld [vmem:[%s2371_s23 + $0x108] sm:$0xff]   ;;  %v2182_v12 = vld [vmem:[%s2371_s23 + $0x1d0] sm:$0xff]   ;;  %vm270_vm10 = vcmp.lt.s32.totalorder %v254_v40, 31425 }
  0x29   : > { %1962 = vmatpush3.bf16.msra.mxu1 %v2156_v17  ;;  %1941 = vmatprep.subr.bf16.mxu0 %v2157_v19  ;;  %v2176_v6 = vld [vmem:[%s2371_s23 + $0x180] sm:$0xff]   ;;  %v2180_v10 = vld [vmem:[%s2371_s23 + $0x188] sm:$0xff]   ;;  %v2183_v13 = vld [vmem:[%s2371_s23 + $0x110] sm:$0xff]  }
  0x2a   : > { %1963 = vmatprep.subr.bf16.mxu1 %v2158_v20  ;;  %v2184_v14 = vld [vmem:[%s2371_s23 + $0x190] sm:$0xff]   ;;  %v2185_v15 = vld [vmem:[%s2371_s23 + $0x158] sm:$0xff]   ;;  %v2189_v20 = vld [vmem:[%s2371_s23 + $0x160] sm:$0xff]  }
  0x2b   : > { %v2186_v16 = vld [vmem:[%s2371_s23 + $0x1d8] sm:$0xff]   ;;  %v2191_v23 = vld [vmem:[%s2371_s23 + $0x120] sm:$0xff]   ;;  %v2193_v25 = vld [vmem:[%s2371_s23 + $0x168] sm:$0xff]  }
  0x2c   : > { %1942 = vmatpush3.bf16.msra.mxu0 %v2159_v21  ;;  %v2187_v17 = vld [vmem:[%s2371_s23 + $0x118] sm:$0xff]   ;;  %v2190_v21 = vld [vmem:[%s2371_s23 + $0x1e0] sm:$0xff]   ;;  %v2196_v31 = vld [vmem:[%s2371_s23 + $0x1a8] sm:$0xff]  }
  0x2d   : > { %1964 = vmatpush3.bf16.msra.mxu1 %v2160_v24  ;;  %1943 = vmatprep.subr.bf16.mxu0 %v2161_v26  ;;  %v2188_v19 = vld [vmem:[%s2371_s23 + $0x198] sm:$0xff]   ;;  %v2192_v24 = vld [vmem:[%s2371_s23 + $0x1a0] sm:$0xff]   ;;  %v2194_v26 = vld [vmem:[%s2371_s23 + $0x1e8] sm:$0xff]  }
  0x2e   : > { %1965 = vmatprep.subr.bf16.mxu1 %v2162_v29  ;;  %v2195_v29 = vld [vmem:[%s2371_s23 + $0x128] sm:$0xff]   ;;  %v2197_v33 = vld [vmem:[%s2371_s23 + $0x170] sm:$0xff]   ;;  %v2201_v44 = vld [vmem:[%s2371_s23 + $0x178] sm:$0xff]  }
  0x2f   : > { %v2198_v36 = vld [vmem:[%s2371_s23 + $0x1f0] sm:$0xff]   ;;  %v2202_v45 = vld [vmem:[%s2371_s23 + $0x1f8] sm:$0xff]   ;;  %v217_v48 = vld [vmem:[%s2366_s19 + $0x28] sm:$0xff] }
  0x30   : > { %1944 = vmatpush3.bf16.msra.mxu0 %v2163_v32  ;;  %v233_v32 = vadd.s32 512, %v2391_v18  ;;  %vm1892_vm12 = vmpackc.low %vm268_vm9, %vm268_vm9  ;;  %v1893_v50 = vpack.c.bf16 %v217_v48, %v217_v48  ;;  %v216_v52 = vld [vmem:[%s2366_s19 + $0x20] sm:$0xff]  ;;  %v2209_v62 = vld [vmem:[%s2371_s23 + $0x248] sm:$0xff]   ;;  %vm276_vm9 = vcmp.lt.s32.totalorder %v2434_v49, 31425 }
  0x31   : > { %1966 = vmatpush3.bf16.msra.mxu1 %v2164_v35  ;;  %1945 = vmatprep.subr.bf16.mxu0 %v2165_v39  ;;  %v235_v35 = vadd.s32 768, %v2391_v18  ;;  %v2199_v39 = vld [vmem:[%s2371_s23 + $0x130] sm:$0xff]   ;;  %vm1898_vm14 = vmpackc.low %vm270_vm10, %vm270_vm10  ;;  %v2205_v58 = vld [vmem:[%s2371_s23 + $0x240] sm:$0xff]   ;;  %vm278_vm10 = vcmp.lt.s32.totalorder %v2441_v54, 31425 }
  0x32   : > { %1967 = vmatprep.subr.bf16.mxu1 %v2166_v41  ;;  %v2200_v41 = vld [vmem:[%s2371_s23 + $0x1b0] sm:$0xff]   ;;  %v2206_v59 = vld [vmem:[%s2371_s23 + $0x2c0] sm:$0xff]   ;;  %v2210_v63 = vld [vmem:[%s2371_s23 + $0x2c8] sm:$0xff]  }
  0x33   : > { %v253_v18 = vadd.s32 %v2396_v22, %v235_v35  ;;  %v2207_v60 = vld [vmem:[%s2371_s23 + $0x200] sm:$0xff]   ;;  %v2235_v28 = vld [vmem:[%s2371_s23 + $0x238] sm:$0xff]   ;;  %v221_v30 = vld [vmem:[%s2366_s19 + $0x48] sm:$0xff] }
  0x34   : > { %1946 = vmatpush3.bf16.msra.mxu0 %v2167_v43  ;;  %v251_v43 = vadd.s32 %v2396_v22, %v233_v32  ;;  %v2208_v61 = vld [vmem:[%s2371_s23 + $0x280] sm:$0xff]   ;;  %vm1904_vm4 = vmpackc.low %vm272_vm1, %vm272_vm1  ;;  %v1905_v27 = vpack.c.bf16 %v221_v30, %v221_v30  ;;  %v2241_v40 = vld [vmem:[%s2371_s23 + $0x348] sm:$0xff]   ;;  %vm1657_vm1 = vcmask 392192  }
  0x35   : > { %1968 = vmatpush3.bf16.msra.mxu1 %v2168_v46  ;;  %1947 = vmatprep.subr.bf16.mxu0 %v2169_v47  ;;  %v2203_v46 = vld [vmem:[%s2371_s23 + $0x138] sm:$0xff]   ;;  %vm269_vm13 = vcmp.lt.s32.totalorder %v253_v18, 31425  ;;  %vm1910_vm6 = vmpackc.low %vm274_vm2, %vm274_vm2  ;;  %v220_v32 = vld [vmem:[%s2366_s19 + $0x40] sm:$0xff] }
  0x36   : > { %1969 = vmatprep.subr.bf16.mxu1 %v2170_v51  ;;  %v2204_v47 = vld [vmem:[%s2371_s23 + $0x1b8] sm:$0xff]   ;;  %vm267_vm11 = vcmp.lt.s32.totalorder %v251_v43, 31425  ;;  %vm1901_vm0 = vmpackc.low %vm269_vm13, %vm269_vm13  ;;  %v1908_v37 = vpack.c.bf16 %v220_v32, %v220_v32  ;;  %v2237_v42 = vld [vmem:[%s2371_s23 + $0x340] sm:$0xff]   ;;  %vm277_vm13 = vcmp.lt.s32.totalorder %v2455_v0, 31425 }
  0x37   : > { %v219_v51 = vld [vmem:[%s2366_s19 + $0x38] sm:$0xff]  ;;  %vm1895_vm15 = vmpackc.low %vm267_vm11, %vm267_vm11  ;;  %v2239_v38 = vld [vmem:[%s2371_s23 + $0x300] sm:$0xff]   ;;  %vm275_vm11 = vcmp.lt.s32.totalorder %v2445_v56, 31425 }
  0x38   : > { %1948 = vmatpush3.bf16.msra.mxu0 %v2171_v53  ;;  %v1899_v22 = vpack.c.bf16 %v219_v51, %v219_v51  ;;  %v1896_v53 = vpack.c.bf16 %v216_v52, %v216_v52  ;;  %v2243_v43 = vld [vmem:[%s2371_s23 + $0x308] sm:$0xff]   ;;  %v2245_v18 = vld [vmem:[%s2371_s23 + $0x350] sm:$0xff]   ;;  %v2249_v48 = vld [vmem:[%s2371_s23 + $0x358] sm:$0xff]  }
  0x39   : > { %1970 = vmatpush3.bf16.msra.mxu1 %v2172_v55  ;;  %1977 = vmatprep.subr.bf16.mxu0 %v2173_v3  ;;  %v218_v55 = vld [vmem:[%s2366_s19 + $0x30] sm:$0xff]  ;;  %v2251_v51 = vld [vmem:[%s2371_s23 + $0x318] sm:$0xff]  }
  0x3a   : > { %1999 = vmatprep.subr.bf16.mxu1 %v2174_v4  ;;  %v1902_v57 = vpack.c.bf16 %v218_v55, %v218_v55  ;;  %v2213_v3 = vld [vmem:[%s2371_s23 + $0x250] sm:$0xff]   ;;  %v2252_v52 = vld [vmem:[%s2371_s23 + $0x398] sm:$0xff]   ;;  %v2255_v55 = vld [vmem:[%s2371_s23 + $0x320] sm:$0xff]  }
  0x3b   : > { %1885 = vmatmul.mubr.msk.bf16.vlgmr.msra.gmra.mrb[0].mxu0 %vm1883_vm7, %v1884_v1  ;;  %v2211_v1 = vld [vmem:[%s2371_s23 + $0x208] sm:$0xff]   ;;  %v2214_v4 = vld [vmem:[%s2371_s23 + $0x2d0] sm:$0xff]   ;;  %vm1907_vm7 = vmpackc.low %vm271_vm3, %vm271_vm3 }
  0x3c   : > { %1891 = vmatmul.mubr.msk.bf16.vlgmr.msra.gmra.mrb[0].mxu1 %vm1889_vm8, %v1890_v2  ;;  %1978 = vmatpush3.bf16.msra.mxu0 %v2175_v5  ;;  %v2212_v2 = vld [vmem:[%s2371_s23 + $0x288] sm:$0xff]   ;;  %v2215_v5 = vld [vmem:[%s2371_s23 + $0x210] sm:$0xff]   ;;  %vm1913_vm8 = vmpackc.low %vm273_vm5, %vm273_vm5 }
  0x3d   : > { %2000 = vmatpush3.bf16.msra.mxu1 %v2176_v6  ;;  %1979 = vmatprep.subr.bf16.mxu0 %v2177_v7  ;;  %v2216_v6 = vld [vmem:[%s2371_s23 + $0x290] sm:$0xff]   ;;  %v2217_v7 = vld [vmem:[%s2371_s23 + $0x258] sm:$0xff]  }
  0x3e   : > { %2001 = vmatprep.subr.bf16.mxu1 %v2178_v8  ;;  %1894 = vmatprep.mubr.msk.bf16.mxu0 %vm1892_vm12, %v1893_v50  ;;  %v2218_v8 = vld [vmem:[%s2371_s23 + $0x2d8] sm:$0xff]   ;;  %vm1916_vm12 = vmpackc.low %vm276_vm9, %vm276_vm9 }
  0x3f   : > { %1900 = vmatprep.mubr.msk.bf16.mxu1 %vm1898_vm14, %v1899_v22  ;;  %v2250_v50 = vld [vmem:[%s2371_s23 + $0x3d8] sm:$0xff]   ;;  %v2253_v22 = vld [vmem:[%s2371_s23 + $0x360] sm:$0xff]   ;;  %vm1922_vm14 = vmpackc.low %vm278_vm10, %vm278_vm10 }
  0x40   : > { %1980 = vmatpush3.bf16.msra.mxu0 %v2179_v9  ;;  %v2219_v9 = vld [vmem:[%s2371_s23 + $0x218] sm:$0xff]  }
  0x41   : > { %2002 = vmatpush3.bf16.msra.mxu1 %v2180_v10  ;;  %1981 = vmatprep.subr.bf16.mxu0 %v2181_v11  ;;  %v2220_v10 = vld [vmem:[%s2371_s23 + $0x298] sm:$0xff]   ;;  %v2221_v11 = vld [vmem:[%s2371_s23 + $0x260] sm:$0xff]  }
  0x42   : > { %2003 = vmatprep.subr.bf16.mxu1 %v2182_v12  ;;  %v2222_v12 = vld [vmem:[%s2371_s23 + $0x2e0] sm:$0xff]  }
  0x44   : > { %1982 = vmatpush3.bf16.msra.mxu0 %v2183_v13  ;;  %v2223_v13 = vld [vmem:[%s2371_s23 + $0x220] sm:$0xff]  }
  0x45   : > { %2004 = vmatpush3.bf16.msra.mxu1 %v2184_v14  ;;  %1983 = vmatprep.subr.bf16.mxu0 %v2185_v15  ;;  %v2224_v14 = vld [vmem:[%s2371_s23 + $0x2a0] sm:$0xff]   ;;  %v2225_v15 = vld [vmem:[%s2371_s23 + $0x268] sm:$0xff]  }
  0x46   : > { %2005 = vmatprep.subr.bf16.mxu1 %v2186_v16  ;;  %v2226_v16 = vld [vmem:[%s2371_s23 + $0x2e8] sm:$0xff]  }
  0x48   : > { %1984 = vmatpush3.bf16.msra.mxu0 %v2187_v17  ;;  %v2227_v17 = vld [vmem:[%s2371_s23 + $0x228] sm:$0xff]  }
  0x49   : > { %2006 = vmatpush3.bf16.msra.mxu1 %v2188_v19  ;;  %1985 = vmatprep.subr.bf16.mxu0 %v2189_v20  ;;  %v2228_v19 = vld [vmem:[%s2371_s23 + $0x2a8] sm:$0xff]   ;;  %v2229_v20 = vld [vmem:[%s2371_s23 + $0x270] sm:$0xff]  }
  0x4a   : > { %2007 = vmatprep.subr.bf16.mxu1 %v2190_v21  ;;  %v2230_v21 = vld [vmem:[%s2371_s23 + $0x2f0] sm:$0xff]  }
  0x4c   : > { %1986 = vmatpush3.bf16.msra.mxu0 %v2191_v23  ;;  %v2231_v23 = vld [vmem:[%s2371_s23 + $0x230] sm:$0xff]  }
  0x4d   : > { %2008 = vmatpush3.bf16.msra.mxu1 %v2192_v24  ;;  %1987 = vmatprep.subr.bf16.mxu0 %v2193_v25  ;;  %v2232_v24 = vld [vmem:[%s2371_s23 + $0x2b0] sm:$0xff]   ;;  %v2233_v25 = vld [vmem:[%s2371_s23 + $0x278] sm:$0xff]  }
  0x4e   : > { %2009 = vmatprep.subr.bf16.mxu1 %v2194_v26  ;;  %v2234_v26 = vld [vmem:[%s2371_s23 + $0x2f8] sm:$0xff]  }
  0x50   : > { %1988 = vmatpush3.bf16.msra.mxu0 %v2195_v29  ;;  %v2236_v29 = vld [vmem:[%s2371_s23 + $0x2b8] sm:$0xff]  }
  0x51   : > { %2010 = vmatpush3.bf16.msra.mxu1 %v2196_v31  ;;  %1989 = vmatprep.subr.bf16.mxu0 %v2197_v33  ;;  %v223_v31 = vld [vmem:[%s2366_s19 + $0x58] sm:$0xff]  ;;  %v222_v33 = vld [vmem:[%s2366_s19 + $0x50] sm:$0xff] }
  0x52   : > { %2011 = vmatprep.subr.bf16.mxu1 %v2198_v36  ;;  %v1911_v34 = vpack.c.bf16 %v223_v31, %v223_v31  ;;  %v1914_v35 = vpack.c.bf16 %v222_v33, %v222_v33  ;;  %v2238_v36 = vld [vmem:[%s2371_s23 + $0x3c0] sm:$0xff]  }
  0x54   : > { %1990 = vmatpush3.bf16.msra.mxu0 %v2199_v39  ;;  %v2240_v39 = vld [vmem:[%s2371_s23 + $0x380] sm:$0xff]  }
  0x55   : > { %2012 = vmatpush3.bf16.msra.mxu1 %v2200_v41  ;;  %1991 = vmatprep.subr.bf16.mxu0 %v2201_v44  ;;  %v2242_v41 = vld [vmem:[%s2371_s23 + $0x3c8] sm:$0xff]  }
  0x56   : > { %2013 = vmatprep.subr.bf16.mxu1 %v2202_v45  ;;  %v2244_v44 = vld [vmem:[%s2371_s23 + $0x388] sm:$0xff]   ;;  %v2246_v45 = vld [vmem:[%s2371_s23 + $0x3d0] sm:$0xff]  }
  0x58   : > { %1992 = vmatpush3.bf16.msra.mxu0 %v2203_v46  ;;  %v2247_v46 = vld [vmem:[%s2371_s23 + $0x310] sm:$0xff]  }
  0x59   : > { %2014 = vmatpush3.bf16.msra.mxu1 %v2204_v47  ;;  %2021 = vmatprep.subr.bf16.mxu0 %v2205_v58  ;;  %v2248_v47 = vld [vmem:[%s2371_s23 + $0x390] sm:$0xff]   ;;  %v2257_v58 = vld [vmem:[%s2371_s23 + $0x368] sm:$0xff]  }
  0x5a   : > { %2043 = vmatprep.subr.bf16.mxu1 %v2206_v59  ;;  %v2258_v59 = vld [vmem:[%s2371_s23 + $0x3e8] sm:$0xff]  }
  0x5b   : > { %1897 = vmatmul.mubr.msk.bf16.vlgmr.msra.gmra.mrb[4].mxu0 %vm1895_vm15, %v1896_v53  ;;  %v2254_v53 = vld [vmem:[%s2371_s23 + $0x3e0] sm:$0xff]   ;;  %vm1919_vm15 = vmpackc.low %vm275_vm11, %vm275_vm11 }
  0x5c   : > { %1903 = vmatmul.mubr.msk.bf16.vlgmr.msra.gmra.mrb[4].mxu1 %vm1901_vm0, %v1902_v57  ;;  %2022 = vmatpush3.bf16.msra.mxu0 %v2207_v60  ;;  %v2256_v57 = vld [vmem:[%s2371_s23 + $0x3a0] sm:$0xff]   ;;  %v2259_v60 = vld [vmem:[%s2371_s23 + $0x328] sm:$0xff]   ;;  %vm1925_vm0 = vmpackc.low %vm277_vm13, %vm277_vm13 }
  0x5d   : > { %2044 = vmatpush3.bf16.msra.mxu1 %v2208_v61  ;;  %2023 = vmatprep.subr.bf16.mxu0 %v2209_v62  ;;  %v2260_v61 = vld [vmem:[%s2371_s23 + $0x3a8] sm:$0xff]   ;;  %v2261_v62 = vld [vmem:[%s2371_s23 + $0x370] sm:$0xff]  }
  0x5e   : > { %2045 = vmatprep.subr.bf16.mxu1 %v2210_v63  ;;  %1906 = vmatprep.mubr.msk.bf16.mxu0 %vm1904_vm4, %v1905_v27  ;;  %v2262_v63 = vld [vmem:[%s2371_s23 + $0x3f0] sm:$0xff]  }
  0x5f   : > { %1912 = vmatprep.mubr.msk.bf16.mxu1 %vm1910_vm6, %v1911_v34 }
  0x60   : > { %2024 = vmatpush3.bf16.msra.mxu0 %v2211_v1  ;;  %v2263_v1 = vld [vmem:[%s2371_s23 + $0x330] sm:$0xff]  }
  0x61   : > { %2046 = vmatpush3.bf16.msra.mxu1 %v2212_v2  ;;  %2025 = vmatprep.subr.bf16.mxu0 %v2213_v3  ;;  %v2264_v2 = vld [vmem:[%s2371_s23 + $0x3b0] sm:$0xff]   ;;  %v2265_v3 = vld [vmem:[%s2371_s23 + $0x378] sm:$0xff]  }
  0x62   : > { %2047 = vmatprep.subr.bf16.mxu1 %v2214_v4  ;;  %v2266_v4 = vld [vmem:[%s2371_s23 + $0x3f8] sm:$0xff]  }
  0x64   : > { %2026 = vmatpush3.bf16.msra.mxu0 %v2215_v5  ;;  %v2267_v5 = vld [vmem:[%s2371_s23 + $0x338] sm:$0xff]  }
  0x65   : > { %2048 = vmatpush3.bf16.msra.mxu1 %v2216_v6  ;;  %2027 = vmatprep.subr.bf16.mxu0 %v2217_v7  ;;  %v2268_v6 = vld [vmem:[%s2371_s23 + $0x3b8] sm:$0xff]   ;;  %v225_v7 = vld [vmem:[%s2366_s19 + $0x68] sm:$0xff] }
  0x66   : > { %2049 = vmatprep.subr.bf16.mxu1 %v2218_v8  ;;  %v227_v8 = vld [vmem:[%s2366_s19 + $0x78] sm:$0xff] }
  0x67   : > { %v1923_v49 = vpack.c.bf16 %v227_v8, %v227_v8 }
  0x68   : > { %2028 = vmatpush3.bf16.msra.mxu0 %v2219_v9  ;;  %v1917_v9 = vpack.c.bf16 %v225_v7, %v225_v7 }
  0x69   : > { %2050 = vmatpush3.bf16.msra.mxu1 %v2220_v10  ;;  %2029 = vmatprep.subr.bf16.mxu0 %v2221_v11  ;;  %v224_v10 = vld [vmem:[%s2366_s19 + $0x60] sm:$0xff]  ;;  %v226_v11 = vld [vmem:[%s2366_s19 + $0x70] sm:$0xff] }
  0x6a   : > { %2051 = vmatprep.subr.bf16.mxu1 %v2222_v12  ;;  %v1920_v12 = vpack.c.bf16 %v224_v10, %v224_v10 }
  0x6c   : > { %2030 = vmatpush3.bf16.msra.mxu0 %v2223_v13  ;;  %v1926_v13 = vpack.c.bf16 %v226_v11, %v226_v11 }
  0x6d   : > { %2052 = vmatpush3.bf16.msra.mxu1 %v2224_v14  ;;  %2031 = vmatprep.subr.bf16.mxu0 %v2225_v15 }
  0x6e   : > { %2053 = vmatprep.subr.bf16.mxu1 %v2226_v16 }
  0x70   : > { %2032 = vmatpush3.bf16.msra.mxu0 %v2227_v17 }
  0x71   : > { %2054 = vmatpush3.bf16.msra.mxu1 %v2228_v19  ;;  %2033 = vmatprep.subr.bf16.mxu0 %v2229_v20 }
  0x72   : > { %2055 = vmatprep.subr.bf16.mxu1 %v2230_v21 }
  0x74   : > { %2034 = vmatpush3.bf16.msra.mxu0 %v2231_v23 }
  0x75   : > { %2056 = vmatpush3.bf16.msra.mxu1 %v2232_v24  ;;  %2035 = vmatprep.subr.bf16.mxu0 %v2233_v25 }
  0x76   : > { %2057 = vmatprep.subr.bf16.mxu1 %v2234_v26 }
  0x78   : > { %2036 = vmatpush3.bf16.msra.mxu0 %v2235_v28 }
  0x79   : > { %2058 = vmatpush3.bf16.msra.mxu1 %v2236_v29  ;;  %2065 = vmatprep.subr.bf16.mxu0 %v2237_v42 }
  0x7a   : > { %2087 = vmatprep.subr.bf16.mxu1 %v2238_v36 }
  0x7b   : > { %1909 = vmatmul.mubr.msk.bf16.vlgmr.msra.gmra.mrb[8].mxu0 %vm1907_vm7, %v1908_v37 }
  0x7c   : > { %1915 = vmatmul.mubr.msk.bf16.vlgmr.msra.gmra.mrb[8].mxu1 %vm1913_vm8, %v1914_v35  ;;  %2066 = vmatpush3.bf16.msra.mxu0 %v2239_v38 }
  0x7d   : > { %2088 = vmatpush3.bf16.msra.mxu1 %v2240_v39  ;;  %2067 = vmatprep.subr.bf16.mxu0 %v2241_v40 }
  0x7e   : > { %2089 = vmatprep.subr.bf16.mxu1 %v2242_v41  ;;  %1918 = vmatprep.mubr.msk.bf16.mxu0 %vm1916_vm12, %v1917_v9 }
  0x7f   : > { %1924 = vmatprep.mubr.msk.bf16.mxu1 %vm1922_vm14, %v1923_v49 }
  0x80   : > { %2068 = vmatpush3.bf16.msra.mxu0 %v2243_v43 }
  0x81   : > { %2090 = vmatpush3.bf16.msra.mxu1 %v2244_v44  ;;  %2069 = vmatprep.subr.bf16.mxu0 %v2245_v18 }
  0x82   : > { %2091 = vmatprep.subr.bf16.mxu1 %v2246_v45 }
  0x84   : > { %2070 = vmatpush3.bf16.msra.mxu0 %v2247_v46 }
  0x85   : > { %2092 = vmatpush3.bf16.msra.mxu1 %v2248_v47  ;;  %2071 = vmatprep.subr.bf16.mxu0 %v2249_v48 }
  0x86   : > { %2093 = vmatprep.subr.bf16.mxu1 %v2250_v50 }
  0x88   : > { %2072 = vmatpush3.bf16.msra.mxu0 %v2251_v51 }
  0x89   : > { %2094 = vmatpush3.bf16.msra.mxu1 %v2252_v52  ;;  %2073 = vmatprep.subr.bf16.mxu0 %v2253_v22 }
  0x8a   : > { %2095 = vmatprep.subr.bf16.mxu1 %v2254_v53 }
  0x8c   : > { %2074 = vmatpush3.bf16.msra.mxu0 %v2255_v55 }
  0x8d   : > { %2096 = vmatpush3.bf16.msra.mxu1 %v2256_v57  ;;  %2075 = vmatprep.subr.bf16.mxu0 %v2257_v58 }
  0x8e   : > { %2097 = vmatprep.subr.bf16.mxu1 %v2258_v59 }
  0x90   : > { %2076 = vmatpush3.bf16.msra.mxu0 %v2259_v60  ;;  %v311_v60 = vld [vmem:[#allocation2] sm:$0xff] }
  0x91   : > { %2098 = vmatpush3.bf16.msra.mxu1 %v2260_v61  ;;  %2077 = vmatprep.subr.bf16.mxu0 %v2261_v62 }
  0x92   : > { %2099 = vmatprep.subr.bf16.mxu1 %v2262_v63 }
  0x94   : > { %2078 = vmatpush3.bf16.msra.mxu0 %v2263_v1 }
  0x95   : > { %2100 = vmatpush3.bf16.msra.mxu1 %v2264_v2  ;;  %2079 = vmatprep.subr.bf16.mxu0 %v2265_v3 }
  0x96   : > { %2101 = vmatprep.subr.bf16.mxu1 %v2266_v4 }
  0x98   : > { %2080 = vmatpush3.bf16.msra.mxu0 %v2267_v5 }
  0x99   : > { %2102 = vmatpush3.bf16.msra.mxu1 %v2268_v6 }
  0x9b   : > { %1921 = vmatmul.mubr.msk.bf16.vlgmr.msra.gmra.mrb[12].mxu0 %vm1919_vm15, %v1920_v12 }
  0x9c   : > { %1927 = vmatmul.mubr.msk.bf16.vlgmr.msra.gmra.mrb[12].mxu1 %vm1925_vm0, %v1926_v13 }
 0x10e   : > { %v1949_v54 = vpop.f32.mrb[0].mxu0 }
 0x10f   : > { %v1971_v56 = vpop.f32.mrb[0].mxu1  ;;  %v1950_v14 = vpop.f32.mrb[1].mxu0 }
 0x110   : > { %v1972_v15 = vpop.f32.mrb[1].mxu1  ;;  %v1951_v16 = vadd.f32 %v1950_v14, %v1949_v54  ;;  %v1952_v17 = vpop.f32.mrb[2].mxu0 }
 0x111   : > { %v1973_v0 = vadd.f32 %v1972_v15, %v1971_v56  ;;  %v1974_v19 = vpop.f32.mrb[2].mxu1  ;;  %v1953_v20 = vpop.f32.mrb[3].mxu0 }
 0x112   : > { %v1975_v21 = vpop.f32.mrb[3].mxu1 }
 0x113   : > { %v1411_v23 = vadd.f32 %v1973_v0, %v1951_v16 }
 0x12e   : > { %v1993_v24 = vpop.f32.mrb[4].mxu0 }
 0x12f   : > { %v2015_v25 = vpop.f32.mrb[4].mxu1  ;;  %v1994_v26 = vpop.f32.mrb[5].mxu0 }
 0x130   : > { %v1995_v28 = vadd.f32 %v1994_v26, %v1993_v24  ;;  %v2016_v29 = vpop.f32.mrb[5].mxu1  ;;  %v1996_v30 = vpop.f32.mrb[6].mxu0 }
 0x131   : > { %v2017_v27 = vadd.f32 %v2016_v29, %v2015_v25  ;;  %v2018_v31 = vpop.f32.mrb[6].mxu1  ;;  %v1997_v32 = vpop.f32.mrb[7].mxu0 }
 0x132   : > { %v1451_v34 = vadd.f32 %v1995_v28, %v1411_v23  ;;  %v2019_v37 = vpop.f32.mrb[7].mxu1 }
 0x134   : > { %v1491_v33 = vadd.f32 %v2017_v27, %v1451_v34 }
 0x14e   : > { %v2037_v35 = vpop.f32.mrb[8].mxu0 }
 0x14f   : > { %v2059_v42 = vpop.f32.mrb[8].mxu1  ;;  %v2038_v36 = vpop.f32.mrb[9].mxu0 }
 0x150   : > { %v2039_v38 = vadd.f32 %v2038_v36, %v2037_v35  ;;  %v2060_v39 = vpop.f32.mrb[9].mxu1  ;;  %v2040_v40 = vpop.f32.mrb[10].mxu0 }
 0x151   : > { %v2061_v41 = vadd.f32 %v2060_v39, %v2059_v42  ;;  %v2062_v43 = vpop.f32.mrb[10].mxu1  ;;  %v2041_v44 = vpop.f32.mrb[11].mxu0 }
 0x152   : > { %v1531_v18 = vadd.f32 %v2039_v38, %v1491_v33  ;;  %v2063_v45 = vpop.f32.mrb[11].mxu1 }
 0x154   : > { %v1571_v46 = vadd.f32 %v2061_v41, %v1531_v18 }
 0x16e   : > { %v2081_v47 = vpop.f32.mrb[12].mxu0 }
 0x16f   : > { %v2103_v48 = vpop.f32.mrb[12].mxu1  ;;  %v2082_v50 = vpop.f32.mrb[13].mxu0 }
 0x170   : > { %v2104_v51 = vpop.f32.mrb[13].mxu1  ;;  %v2083_v52 = vadd.f32 %v2082_v50, %v2081_v47  ;;  %v2084_v53 = vpop.f32.mrb[14].mxu0 }
 0x171   : > { %v2105_v22 = vadd.f32 %v2104_v51, %v2103_v48  ;;  %v2106_v55 = vpop.f32.mrb[14].mxu1  ;;  %v2085_v57 = vpop.f32.mrb[15].mxu0 }
 0x172   : > { %v2107_v58 = vpop.f32.mrb[15].mxu1  ;;  %v1611_v59 = vadd.f32 %v2083_v52, %v1571_v46  ;;  %1662 = sbr.rel (%p1928_p7) target bundleno = 385 (0x181), region = 36 }
 0x174   : > { %v1651_v61 = vadd.f32 %v2105_v22, %v1611_v59 }
 0x176   : > { %v1656_v62 = vadd.f32 %v1651_v61, %v311_v60 }
 0x178   : > { %1658 = vst.msk [vmem:[#allocation2] sm:$0xff] %vm1657_vm1, %v1656_v62 }
 0x17f   : > { %v1663_v63 = vld [vmem:[#allocation2] sm:$0xff] }
 0x180   : > { %1664 = vst.msk [vmem:[#allocation3] sm:$0xff] %vm1657_vm1, %v1663_v63 }
 0x181 PF: > { %p2586_p8 = scmp.eq.s32.totalorder %s1742_s12, 15  ;;  %s2324_s26 = smov [#allocation3]  }
 0x182   : > { %s1674_s27 = sshll.u32 %s2324_s26, 4  ;;  %s1675_s27 = int_to_ptr.vmem [resolvable:$true] %s1674_s27 }
 0x183   : > { %s2269_s28 = scalar_lea.vmem %s1675_s27, 128  ;;  %p2276_p12 = scmp.lt.s32.totalorder %s1675_s27, %s1675_s27 }
 0x184   : > { %p2270_p9 = scmp.ne.s32.totalorder %s1675_s27, %s2269_s28  ;;  %p2277_p13 = scmp.lt.s32.totalorder %s2269_s28, %s2269_s28 }
 0x186   : > { %p2271_p10 = pnand %p2270_p9, %p2586_p8  ;;  %p2278_p0 = por %p2277_p13, %p2276_p12 }
 0x188   : > { %p2272_p11 = pneg %p2271_p10 }
 0x18a   : > { %p2279_p1 = pnand %p2278_p0, %p2272_p11 }
 0x18c   : > { %2282 = shalt.err (!%p2279_p1)
}
 0x18d   : > { %s2283_s3 = scalar_lea.hbm %s2623_s2, 128 }
 0x18e   : > { %p2284_p2 = scmp.ne.s32.totalorder %s2623_s2, %s2283_s3  ;;  %p2289_p5 = scmp.lt.u32.totalorder %s2283_s3, %s2623_s2 }
 0x190   : > { %p2285_p3 = pnand %p2284_p2, %p2586_p8 }
 0x192   : > { %p2286_p4 = pneg %p2285_p3 }
 0x194   : > { %p2291_p6 = pnand %p2289_p5, %p2286_p4 }
 0x196   : > { %2294 = shalt.err (!%p2291_p6)
}
 0x197   : > { %2110 = dma.vmem_to_hbm [thread:$0]  (%p2586_p8), %s1675_s27, 128, %s2623_s2, [#allocation4]  }
 0x198   : > { %2308 = dma.done.wait (%p2586_p8), [#allocation4], 128  }
 0x199   : > { %2310 = vsyncadd (%p2586_p8), [#allocation4], 4294967168 }
 0x19a PF: > { %s13_s11 = sadd.s32 1, %s2321_s11   ;;  %s2625_s9 = smov %s2317_s10 }
 0x19b   : > { %p10_p7 = scmp.ge.s32.totalorder %s13_s11, 18   ;;  %s2626_s10 = smov %s2628_s13 }
 0x19d   :  { %12 = sbr.rel (!%p10_p7) target bundleno = 2 (0x2), region = 67 }
 0x1a4   :  { %1687 = vsyncpa [#allocation4], 1 }
 0x1a5   :  { %1689 = vsyncpa [#allocation4 + $0x1], 1 }

</bundles_post_ra>
